<compile_context>
chip_gen: v5e
topology: v5e:2x2
jax: 0.10.0
libtpu: 0.0.40
codegen_flags: <defaults>
</compile_context>

<pallas_src>
import math

import jax
import jax.numpy as jnp
import numpy as np
from jax.experimental import pallas as pl
from jax.experimental.pallas import tpu as pltpu

_LANE = 128
_SUBLANE = 16  # bf16 sublane packing: keep N a multiple of 16 -> clean reshapes


def _round_up(v, m):
    return (v + m - 1) // m * m


def _make_dgc_kernel(F_pad, fold_colsum, ones_lane):
    """Build the kernel for one grid step processing TB whole graphs.

    x_ref   : (TB, N, F_in)      node features (bf16)
    adj_ref : (TB, N, N)         dense adjacency (bf16)
    w_ref   : (F_in, 2 * F_pad)  [W1 | W2], zero-padded to lane width (bf16)
    out_ref : (TB, N, F_pad)     f32 output
    """

    def kernel(x_ref, adj_ref, w_ref, out_ref):
        TB, N, F_in = x_ref.shape

        adj = adj_ref[...]                                        # (TB,N,N) bf16

        # --- single fused bf16 projection, f32 accumulation -----------------
        x2d = x_ref[...].reshape(TB * N, F_in)
        xw = jnp.dot(x2d, w_ref[...], preferred_element_type=jnp.float32)
        xw = xw.reshape(TB, N, 2 * F_pad).astype(jnp.bfloat16)
        xw1 = xw[:, :, :F_pad]
        xw2 = xw[:, :, F_pad:]

        if fold_colsum:
            # Put literal ones into one of xw2's zero padding lanes so the
            # column sums of adj fall out of the s2 matmul for free.
            lane = jax.lax.broadcasted_iota(jnp.int32, xw2.shape, 2)
            xw2 = jnp.where(lane == ones_lane, jnp.bfloat16(1.0), xw2)

        # --- aggregation (normalisation deferred to a post-matmul scale) ----
        # s1[b,i,f] = sum_j adj[b,i,j] * xw1[b,j,f]
        s1 = jnp.einsum('bij,bjf->bif', adj, xw1,
                        preferred_element_type=jnp.float32)
        # s2[b,i,f] = sum_j adj[b,j,i] * xw2[b,j,f]   (adj.T never materialised)
        s2 = jnp.einsum('bji,bjf->bif', adj, xw2,
                        preferred_element_type=jnp.float32)

        # Row sums: lane reduction with f32 accumulation -> (TB, N, 1).
        rowsum = jnp.sum(adj, axis=2, keepdims=True, dtype=jnp.float32)
        if fold_colsum:
            colsum = s2[:, :, ones_lane:ones_lane + 1]            # (TB, N, 1)
        else:
            # No free padding lane: tiny ones-vector matmul (lands directly in
            # the (TB,N,1) sublane layout, no XLU transpose).
            ones_col = jnp.ones((TB, N, 1), dtype=adj.dtype)
            colsum = jnp.einsum('bji,bjo->bio', adj, ones_col,
                                preferred_element_type=jnp.float32)

        # Guard padded / isolated nodes (all-zero row or column) vs inf/nan.
        rowsum = jnp.where(rowsum == 0.0, 1.0, rowsum)
        colsum = jnp.where(colsum == 0.0, 1.0, colsum)
        inv_row = 1.0 / rowsum        # exact; only 2*TB*N divides per step
        inv_col = 1.0 / colsum

        out1 = jnp.maximum(s1 * inv_row, 0.0)
        out2 = jnp.maximum(s2 * inv_col, 0.0)

        # Dropout is identity in eval mode.
        out_ref[...] = ((out1 + out2) * 0.5).astype(out_ref.dtype)

    return kernel


def _vmem_model(N_p, F_in, F_pad):
    """Bytes per grid step = fixed + TB * per_graph (blocks + in-kernel temps)."""
    fixed = 2 * (F_in * 2 * F_pad * 2)                 # [W1|W2] bf16, x2 buffers
    per_graph = (
        2 * (N_p * F_in * 2                            # x block (bf16), x2 bufs
             + N_p * N_p * 2                           # adj block (bf16), x2 bufs
             + N_p * F_pad * 4)                        # out block (f32), x2 bufs
        + N_p * (2 * F_pad * 4                         # xw (f32)
                 + 2 * F_pad * 2                       # xw bf16 copy
                 + 4 * F_pad * 4)                      # s1, s2, out1, out2 (f32)
    )
    return fixed, per_graph


def _vmem_budget_and_cap():
    """Generation-aware sizing (v5e/v6e: 128 MiB VMEM, v7x: 64 MiB per core)."""
    try:
        cap = int(pltpu.get_tpu_info().vmem_capacity_bytes)
    except Exception:
        cap = 128 << 20
    cap = max(cap, 32 << 20)
    limit_cap = min(cap - (16 << 20), int(cap * 0.85))  # Mosaic headroom
    budget = max(limit_cap - (12 << 20), 8 << 20)       # blocks + temps budget
    return budget, limit_cap


def directed_graph_convolution(x, adj, w1, w2):
    """x: (B, N, F_in), adj: (B, N, N), w1/w2: (F_in, F_out) -> f32 (B, N, F_out)."""
    B, N, F_in = x.shape
    F_out = w1.shape[1]
    F_pad = _round_up(F_out, _LANE)     # lane-dense output / unmasked stores
    N_p = _round_up(N, _SUBLANE)        # sublane-clean reshapes for bf16
    fold_colsum = F_pad > F_out

    # ---- graphs-per-step from one consistent VMEM model ---------------------
    budget, limit_cap = _vmem_budget_and_cap()
    fixed, per_graph = _vmem_model(N_p, F_in, F_pad)
    tb_cap = max(1, B // 2)             # grid >= 2 so v7x's second TC gets work
    TB = int(max(1, min(tb_cap, (budget - fixed) // max(per_graph, 1))))
    G = (B + TB - 1) // TB              # TB need not divide B: pad the batch
    B_pad = G * TB

    model_bytes = fixed + TB * per_graph
    vmem_limit = int(min(max(model_bytes + (8 << 20), 32 << 20), limit_cap))

    # ---- operands: zero padding + bf16 MXU operands --------------------------
    f32 = jnp.float32
    x_p = jnp.pad(x.astype(f32), ((0, B_pad - B), (0, N_p - N), (0, 0)))
    adj_p = jnp.pad(adj.astype(f32), ((0, B_pad - B), (0, N_p - N), (0, N_p - N)))
    pad_w = ((0, 0), (0, F_pad - F_out))
    w_cat = jnp.concatenate([jnp.pad(w1.astype(f32), pad_w),
                             jnp.pad(w2.astype(f32), pad_w)], axis=1)

    x_b = x_p.astype(jnp.bfloat16)
    adj_b = adj_p.astype(jnp.bfloat16)
    w_b = w_cat.astype(jnp.bfloat16)

    flops = (2 * B_pad * N_p * F_in * 2 * F_pad        # fused projection
             + 2 * 2 * B_pad * N_p * N_p * F_pad)      # two aggregation matmuls
    if not fold_colsum:
        flops += 2 * B_pad * N_p * N_p                 # separate column-sum matmul
    cost = pl.CostEstimate(
        flops=flops,
        transcendentals=0,
        bytes_accessed=2 * (B_pad * N_p * F_in + B_pad * N_p * N_p
                            + F_in * 2 * F_pad) + 4 * B_pad * N_p * F_pad,
    )

    kernel = _make_dgc_kernel(F_pad, fold_colsum, F_out)

    out_padded = pl.pallas_call(
        kernel,
        out_shape=jax.ShapeDtypeStruct((B_pad, N_p, F_pad), jnp.float32),
        grid_spec=pltpu.PrefetchScalarGridSpec(
            num_scalar_prefetch=0,
            grid=(G,),
            in_specs=[
                pl.BlockSpec((TB, N_p, F_in), lambda g: (g, 0, 0)),
                pl.BlockSpec((TB, N_p, N_p), lambda g: (g, 0, 0)),
                pl.BlockSpec((F_in, 2 * F_pad), lambda g: (0, 0)),
            ],
            out_specs=pl.BlockSpec((TB, N_p, F_pad), lambda g: (g, 0, 0)),
        ),
        compiler_params=pltpu.CompilerParams(
            dimension_semantics=("parallel",),   # batch steps split across TCs
            vmem_limit_bytes=vmem_limit,
        ),
        cost_estimate=cost,
    )(x_b, adj_b, w_b)

    return out_padded[:B, :N, :F_out]


def xavier_uniform(key, shape, dtype=jnp.float32):
    fan_in, fan_out = shape
    bound = math.sqrt(6.0 / (fan_in + fan_out))
    return jax.random.uniform(key, shape, dtype, minval=-bound, maxval=bound)


def reference(x, adj, w1, w2):
    rowsum = jnp.sum(adj, axis=2, keepdims=True)
    norm_adj = adj / rowsum
    adj_t = jnp.swapaxes(adj, 1, 2)
    inv_norm_adj = adj_t / jnp.sum(adj_t, axis=2, keepdims=True)
    o1 = jax.nn.relu(jnp.einsum("bij,bjf->bif", norm_adj,
                                jnp.einsum("bnf,fo->bno", x, w1)))
    o2 = jax.nn.relu(jnp.einsum("bij,bjf->bif", inv_norm_adj,
                                jnp.einsum("bnf,fo->bno", x, w2)))
    return (o1 + o2) / 2.0


if __name__ == "__main__":
    B, N, F_IN, F_OUT = 2, 8, 32, 32

    key = jax.random.PRNGKey(0)
    kx, kadj, kw1, kw2 = jax.random.split(key, 4)

    x = jax.random.normal(kx, (B, N, F_IN), dtype=jnp.float32)
    # Positive adjacency so row/col sums are nonzero (same assumption PyTorch makes).
    adj = jax.random.uniform(kadj, (B, N, N), dtype=jnp.float32,
                             minval=0.1, maxval=1.0)

    w1 = xavier_uniform(kw1, (F_IN, F_OUT))
    w2 = xavier_uniform(kw2, (F_IN, F_OUT))

    out = directed_graph_convolution(x, adj, w1, w2)
    out = jax.block_until_ready(out)

    ref = reference(x, adj, w1, w2)
    # bf16 MXU operands (inputs quantised to bf16, f32 accumulation) give
    # ~1e-2-level drift vs the exact f32/f64 math of the PyTorch module.
    np.testing.assert_allclose(np.asarray(out), np.asarray(ref),
                               rtol=3e-2, atol=3e-2)

    print("KERNEL_OK")
</pallas_src>

<mosaic_0001>
module attributes {stable_mosaic.version = 11 : i64} {
  func.func @kernel(%arg0: i32, %arg1: memref<1x16x32xbf16, #tpu.memory_space<vmem>>, %arg2: memref<1x16x16xbf16, #tpu.memory_space<vmem>>, %arg3: memref<32x256xbf16, #tpu.memory_space<vmem>>, %arg4: memref<1x16x128xf32, #tpu.memory_space<vmem>>) attributes {dimension_semantics = [#tpu.dimension_semantics<parallel>], iteration_bounds = array<i64: 2>, scalar_prefetch = 0 : i64, scratch_operands = 0 : i64, tpu.core_type = #tpu.core_type<tc>, window_params = [{transform_indices = @transform_0, window_bounds = array<i64: 1, 16, 32>}, {transform_indices = @transform_1, window_bounds = array<i64: 1, 16, 16>}, {pipeline_mode = #tpu.pipeline_mode<synchronous>, transform_indices = @transform_2, window_bounds = array<i64: 32, 256>}, {transform_indices = @transform_3, window_bounds = array<i64: 1, 16, 128>}]} {
    %c0 = arith.constant 0 : index
    %c0_0 = arith.constant 0 : index
    %c0_1 = arith.constant 0 : index
    %0 = vector.load %arg2[%c0, %c0_0, %c0_1] : memref<1x16x16xbf16, #tpu.memory_space<vmem>>, vector<1x16x16xbf16>
    %c0_2 = arith.constant 0 : index
    %c0_3 = arith.constant 0 : index
    %c0_4 = arith.constant 0 : index
    %1 = vector.load %arg1[%c0_2, %c0_3, %c0_4] : memref<1x16x32xbf16, #tpu.memory_space<vmem>>, vector<1x16x32xbf16>
    %2 = vector.shape_cast %1 : vector<1x16x32xbf16> to vector<16x32xbf16>
    %c0_5 = arith.constant 0 : index
    %c0_6 = arith.constant 0 : index
    %3 = vector.load %arg3[%c0_5, %c0_6] : memref<32x256xbf16, #tpu.memory_space<vmem>>, vector<32x256xbf16>
    %cst = arith.constant dense<0.000000e+00> : vector<16x256xf32>
    %4 = tpu.matmul %2, %3, %cst {dimension_numbers = #tpu.dot_dimension_numbers<[1], [0], [0], [1], [0, 0, 1, 1], [], []>} : vector<16x32xbf16>, vector<32x256xbf16>, vector<16x256xf32> -> vector<16x256xf32>
    %5 = vector.shape_cast %4 : vector<16x256xf32> to vector<1x16x256xf32>
    %6 = arith.truncf %5 : vector<1x16x256xf32> to vector<1x16x256xbf16>
    %7 = vector.extract_strided_slice %6 {offsets = [0, 0, 0], sizes = [1, 16, 128], strides = [1, 1, 1]} : vector<1x16x256xbf16> to vector<1x16x128xbf16>
    %8 = vector.extract_strided_slice %6 {offsets = [0, 0, 128], sizes = [1, 16, 128], strides = [1, 1, 1]} : vector<1x16x256xbf16> to vector<1x16x128xbf16>
    %9 = tpu.iota {dimensions = array<i32: 2>} : vector<1x16x128xi32>
    %c32_i32 = arith.constant 32 : i32
    %10 = vector.broadcast %c32_i32 : i32 to vector<1x16x128xi32>
    %11 = arith.cmpi eq, %9, %10 : vector<1x16x128xi32>
    %cst_7 = arith.constant 1.000000e+00 : bf16
    %12 = vector.broadcast %cst_7 : bf16 to vector<1x16x128xbf16>
    %13 = arith.select %11, %12, %8 : vector<1x16x128xi1>, vector<1x16x128xbf16>
    "tpu.trace_start"() <{level = 10 : i32, message = "bij,bjf->bif"}> : () -> ()
    %cst_8 = arith.constant dense<0.000000e+00> : vector<1x16x128xf32>
    %14 = tpu.matmul %0, %7, %cst_8 {dimension_numbers = #tpu.dot_dimension_numbers<[2], [1], [1], [2], [0, 0, 0, 1, 1, 2], [0], [0]>} : vector<1x16x16xbf16>, vector<1x16x128xbf16>, vector<1x16x128xf32> -> vector<1x16x128xf32>
    "tpu.trace_stop"() : () -> ()
    "tpu.trace_start"() <{level = 10 : i32, message = "bji,bjf->bif"}> : () -> ()
    %cst_9 = arith.constant dense<0.000000e+00> : vector<1x16x128xf32>
    %15 = tpu.matmul %0, %13, %cst_9 {dimension_numbers = #tpu.dot_dimension_numbers<[1], [1], [2], [2], [0, 0, 0, 2, 1, 2], [0], [0]>} : vector<1x16x16xbf16>, vector<1x16x128xbf16>, vector<1x16x128xf32> -> vector<1x16x128xf32>
    "tpu.trace_stop"() : () -> ()
    %16 = arith.extf %0 : vector<1x16x16xbf16> to vector<1x16x16xf32>
    %cst_10 = arith.constant dense<0.000000e+00> : vector<1x16xf32>
    %17 = vector.multi_reduction <add>, %16, %cst_10 [2] : vector<1x16x16xf32> to vector<1x16xf32>
    %18 = vector.shape_cast %17 : vector<1x16xf32> to vector<1x16x1xf32>
    %19 = vector.extract_strided_slice %15 {offsets = [0, 0, 32], sizes = [1, 16, 1], strides = [1, 1, 1]} : vector<1x16x128xf32> to vector<1x16x1xf32>
    %cst_11 = arith.constant 0.000000e+00 : f32
    %20 = vector.broadcast %cst_11 : f32 to vector<1x16x1xf32>
    %21 = arith.cmpf oeq, %18, %20 : vector<1x16x1xf32>
    %cst_12 = arith.constant 1.000000e+00 : f32
    %22 = vector.broadcast %cst_12 : f32 to vector<1x16x1xf32>
    %23 = arith.select %21, %22, %18 : vector<1x16x1xi1>, vector<1x16x1xf32>
    %cst_13 = arith.constant 0.000000e+00 : f32
    %24 = vector.broadcast %cst_13 : f32 to vector<1x16x1xf32>
    %25 = arith.cmpf oeq, %19, %24 : vector<1x16x1xf32>
    %cst_14 = arith.constant 1.000000e+00 : f32
    %26 = vector.broadcast %cst_14 : f32 to vector<1x16x1xf32>
    %27 = arith.select %25, %26, %19 : vector<1x16x1xi1>, vector<1x16x1xf32>
    %cst_15 = arith.constant 1.000000e+00 : f32
    %28 = vector.broadcast %cst_15 : f32 to vector<1x16x1xf32>
    %29 = arith.divf %28, %23 : vector<1x16x1xf32>
    %cst_16 = arith.constant 1.000000e+00 : f32
    %30 = vector.broadcast %cst_16 : f32 to vector<1x16x1xf32>
    %31 = arith.divf %30, %27 : vector<1x16x1xf32>
    %32 = vector.broadcast %29 : vector<1x16x1xf32> to vector<1x16x128xf32>
    %33 = arith.mulf %14, %32 : vector<1x16x128xf32>
    %cst_17 = arith.constant 0.000000e+00 : f32
    %34 = vector.broadcast %cst_17 : f32 to vector<1x16x128xf32>
    %35 = arith.maximumf %33, %34 : vector<1x16x128xf32>
    %36 = vector.broadcast %31 : vector<1x16x1xf32> to vector<1x16x128xf32>
    %37 = arith.mulf %15, %36 : vector<1x16x128xf32>
    %cst_18 = arith.constant 0.000000e+00 : f32
    %38 = vector.broadcast %cst_18 : f32 to vector<1x16x128xf32>
    %39 = arith.maximumf %37, %38 : vector<1x16x128xf32>
    %40 = arith.addf %35, %39 : vector<1x16x128xf32>
    %cst_19 = arith.constant 5.000000e-01 : f32
    %41 = vector.broadcast %cst_19 : f32 to vector<1x16x128xf32>
    %42 = arith.mulf %40, %41 : vector<1x16x128xf32>
    %c0_20 = arith.constant 0 : index
    %c0_21 = arith.constant 0 : index
    %c0_22 = arith.constant 0 : index
    %43 = vector.load %arg4[%c0_20, %c0_21, %c0_22] : memref<1x16x128xf32, #tpu.memory_space<vmem>>, vector<1x16x128xf32>
    tpu.vector_store %arg4[%c0_20, %c0_21, %c0_22], %42 {strides = array<i32>} : memref<1x16x128xf32, #tpu.memory_space<vmem>>, vector<1x16x128xf32>,
    return
  }
  func.func @transform_0(%arg0: i32) -> (i32, i32, i32) {
    %c0_i32 = arith.constant 0 : i32
    %c0_i32_0 = arith.constant 0 : i32
    %c0_i32_1 = arith.constant 0 : i32
    return %arg0, %c0_i32, %c0_i32_0 : i32, i32, i32
  }
  func.func @transform_1(%arg0: i32) -> (i32, i32, i32) {
    %c0_i32 = arith.constant 0 : i32
    %c0_i32_0 = arith.constant 0 : i32
    %c0_i32_1 = arith.constant 0 : i32
    return %arg0, %c0_i32, %c0_i32_0 : i32, i32, i32
  }
  func.func @transform_2(%arg0: i32) -> (i32, i32) {
    %c0_i32 = arith.constant 0 : i32
    %c0_i32_0 = arith.constant 0 : i32
    %c0_i32_1 = arith.constant 0 : i32
    return %c0_i32, %c0_i32_0 : i32, i32
  }
  func.func @transform_3(%arg0: i32) -> (i32, i32, i32) {
    %c0_i32 = arith.constant 0 : i32
    %c0_i32_0 = arith.constant 0 : i32
    %c0_i32_1 = arith.constant 0 : i32
    return %arg0, %c0_i32, %c0_i32_0 : i32, i32, i32
  }
}

</mosaic_0001>

<bundles_post_ra>
// kernel: tpu_custom_call.1
= control target key start
LH: loop header
LB: loop body
LE: loop exit
PB: predicated region body
PF: predicated region fallthrough
CT: control target
= control target key end

     0   :  { %s1144_s0 = inlined_call_operand.hbm [shape: bf16[2,16,32], index: 0, kind: input, shape index: {}]   ;;  %s1145_s1 = inlined_call_operand.hbm [shape: bf16[2,16,16], index: 1, kind: input, shape index: {}]   ;;  %s1146_s2 = inlined_call_operand.hbm [shape: bf16[32,256], index: 2, kind: input, shape index: {}]   ;;  %s1147_s3 = inlined_call_operand.hbm [shape: f32[2,16,128], index: 3, kind: output, shape index: {}]  }
   0x1   :  { %1148 = sst [smem:[#allocation13_spill]] %s1144_s0 }
   0x2   :  { %1149 = sst [smem:[#allocation14_spill]] %s1146_s2 }
   0x3   :  { %8 = vsyncpa [#allocation3], 0 }
   0x4   :  { %10 = vsyncpa [#allocation3 + $0x1], 0 }
   0x5   :  { %11 = vsyncpa [#allocation6], 0 }
   0x6   :  { %13 = vsyncpa [#allocation6 + $0x1], 0 }
   0x7   :  { %14 = vsyncpa [#allocation4], 0 }
   0x8   :  { %16 = vsyncpa [#allocation4 + $0x1], 0  ;;  %s950_s12 = smov 0   ;;  %s952_s13 = smov 0  }
   0x9   :  { %s954_s14 = smov 0   ;;  %s956_s15 = smov 0  }
   0xa LB: > { %s971_s16 = sadd.s32 4294967295, %s920_s15   ;;  %s618_s17 = sadd.s32 4294967294, %s920_s15   ;;  %s920_s15 = sphi %s956_s15, %s1163_s15   ;;  %s916_s14 = sphi %s954_s14, %s1162_s14   ;;  %s912_s13 = sphi %s952_s13, %s1161_s13   ;;  %s908_s12 = sphi %s950_s12, %s1160_s12  }
   0xb   : > { %p42_p0 = scmp.ne.s32.totalorder %s912_s13, %s908_s12  ;;  %p43_p1 = scmp.eq.s32.totalorder %s971_s16, 0 }
   0xc   : > { %p113_p2 = scmp.eq.s32.totalorder %s971_s16, 1  ;;  %p119_p3 = scmp.eq.s32.totalorder %s618_s17, 1 }
   0xd   : > { %p980_p4 = por %p43_p1, %p42_p0  ;;  %p619_p5 = scmp.ge.s32.totalorder %s920_s15, 1 }
   0xe   : > { %p985_p6 = por %p119_p3, %p42_p0  ;;  %p126_p7 = scmp.lt.s32.totalorder %s920_s15, 3 }
   0xf   : > { %s1152_s2 = sld [smem:[#allocation14_spill]]  ;;  %s922_s24 = smov [#allocation7]  }
  0x10   : > { %p993_p8 = pnand %p619_p5, %p126_p7  ;;  %s139_s25 = sshll.u32 %s922_s24, 4  ;;  %s140_s25 = int_to_ptr.vmem [resolvable:$true] %s139_s25 }
  0x11   : > { %s1003_s26 = sadd.s32 1, %s920_s15   ;;  %s923_s27 = smov 128  }
  0x12   : > { %p685_p9 = pneg %p993_p8  ;;  %s924_s28 = smov 8  }
  0x13   : > { %s26_s29 = ssub.s32 %s920_s15, %s1003_s26  ;;  %s29_s30 = sadd.s32 1, %s916_s14 }
  0x14   : > { %p686_p10 = pnand %p685_p9, %p43_p1  ;;  %p27_p12 = scmp.eq.s32.totalorder %s26_s29, 0 }
  0x15   : > { %s137_s22 = sshll.u32 %s1152_s2, 4  ;;  %p36_p13 = scmp.ne.s32.totalorder %s916_s14, %s912_s13  ;;  %s138_s22 = int_to_ptr.hbm [resolvable:$true] %s137_s22 }
  0x16   : > { %688 = dma.hbm_to_vmem [thread:$0]  (!%p686_p10), %s138_s22, 512, %s140_s25, [#allocation6], %s923_s27, %s923_s27, %s924_s28  }
  0x17   : > { %p37_p0 = scmp.eq.s32.totalorder %s920_s15, 0  ;;  %p701_p3 = scmp.lt.s32.totalorder %s920_s15, 2 }
  0x18   : > { %s1013_s4 = scalar_select %p27_p12, %s916_s14, %s29_s30  }
  0x19   : > { %p38_p5 = por %p37_p0, %p36_p13  ;;  %p1017_p7 = por %p113_p2, %p36_p13 }
  0x1a   : > { %s153_s6 = sand.u32 1, %s916_s14   ;;  %s666_s7 = sshll.u32 %s920_s15, 3 }
  0x1b   : > { %s1023_s8 = sshll.u32 %s153_s6, 3  ;;  %s1155_s0 = sld [smem:[#allocation13_spill]] }
  0x1c   : > { %s157_s20 = scalar_lea.vmem [#allocation2], %s1023_s8  ;;  %p1031_p9 = pnand %p701_p3, %p38_p5 }
  0x1d   : > { %s165_s21 = sshll.u32 %s157_s20, 4  ;;  %s184_s27 = scalar_lea.hbm %s1145_s1, %s666_s7  ;;  %s166_s21 = int_to_ptr.vmem [resolvable:$true] %s165_s21 }
  0x1e   : > { %s154_s28 = scalar_lea.sflag [#allocation3], %s153_s6  ;;  %p790_p10 = pneg %p1031_p9 }
  0x21   : > { %s162_s11 = scalar_lea.hbm %s1155_s0, %s666_s7 }
  0x22   : > { %s163_s17 = sshll.u32 %s162_s11, 4  ;;  %s793_s11 = scalar_lea.hbm %s1155_s0, 16  ;;  %s164_s17 = int_to_ptr.hbm [resolvable:$true] %s163_s17 }
  0x23   : > { %s786_s29 = sshra.s32 %s164_s17, 4  ;;  %s787_s29 = int_to_ptr.hbm [resolvable:$true] %s786_s29 }
  0x24   : > { %s788_s30 = scalar_lea.hbm %s787_s29, 8  ;;  %p794_p0 = scmp.lt.s32.totalorder %s787_s29, %s1155_s0 }
  0x25   : > { %p789_p2 = scmp.ne.s32.totalorder %s787_s29, %s788_s30  ;;  %p795_p3 = scmp.lt.s32.totalorder %s793_s11, %s788_s30 }
  0x27   : > { %p791_p12 = pnand %p790_p10, %p789_p2  ;;  %p796_p5 = por %p795_p3, %p794_p0 }
  0x29   : > { %p792_p13 = pneg %p791_p12 }
  0x2b   : > { %p797_p11 = pnand %p796_p5, %p792_p13 }
  0x2d   : > { %800 = shalt.err (!%p797_p11)
}
  0x2e   : > { %s925_s6 = smov 64   ;;  %s926_s7 = smov 4  }
  0x2f   : > { %692 = dma.hbm_to_vmem [thread:$0]  (!%p1031_p9), %s164_s17, 128, %s166_s21, %s154_s28, %s925_s6, %s925_s6, %s926_s7  }
  0x30   : > { %s185_s25 = sshll.u32 %s184_s27, 4  ;;  %s179_s2 = scalar_lea.vmem [#allocation5], %s1023_s8  ;;  %s186_s25 = int_to_ptr.hbm [resolvable:$true] %s185_s25 }
  0x31   : > { %s187_s9 = sshll.u32 %s179_s2, 4  ;;  %s175_s10 = sand.u32 1, %s920_s15   ;;  %s188_s9 = int_to_ptr.vmem [resolvable:$true] %s187_s9 }
  0x32   : > { %s176_s20 = scalar_lea.sflag [#allocation6], %s175_s10  ;;  %s816_s29 = sshra.s32 %s186_s25, 4  ;;  %s817_s29 = int_to_ptr.hbm [resolvable:$true] %s816_s29 }
  0x33   : > { %s818_s30 = scalar_lea.hbm %s817_s29, 8  ;;  %s823_s0 = scalar_lea.hbm %s1145_s1, 16 }
  0x34   : > { %p819_p2 = scmp.ne.s32.totalorder %s817_s29, %s818_s30  ;;  %p824_p13 = scmp.lt.s32.totalorder %s817_s29, %s1145_s1 }
  0x35   : > { %p825_p0 = scmp.lt.s32.totalorder %s823_s0, %s818_s30 }
  0x36   : > { %p821_p11 = pnand %p819_p2, %p790_p10 }
  0x37   : > { %p826_p3 = por %p825_p0, %p824_p13 }
  0x38   : > { %p822_p12 = pneg %p821_p11 }
  0x3a   : > { %p827_p5 = pnand %p826_p3, %p822_p12 }
  0x3c   : > { %830 = shalt.err (!%p827_p5)
}
  0x3d   : > { %695 = dma.hbm_to_vmem [thread:$0]  (!%p1031_p9), %s186_s25, 128, %s188_s9, %s176_s20, %s925_s6, %s925_s6, %s926_s7  }
  0x3e   : > { %199 = sbr.rel (%p993_p8) target bundleno = 526 (0x20e), region = 32  ;;  %s1067_s2 = sand.u32 (!%p993_p8), 1, %s912_s13  }
  0x3f   : > { %s629_s8 = sshll.u32 (!%p993_p8), %s1067_s2, 3  ;;  %s202_s27 = scalar_lea.sflag (!%p993_p8), [#allocation3], %s1067_s2 }
  0x40   : > { %s205_s28 = scalar_lea.vmem (!%p993_p8), [#allocation2], %s629_s8 }
  0x43   : > { %891 = dma.done.wait (%p980_p4), %s202_s27, 128  }
  0x44   : > { %893 = vsyncadd (%p980_p4), %s202_s27, 4294967168  ;;  %s211_s0 = sand.u32 1, %s971_s16   ;;  %s1076_s23 = scalar_lea.vmem [#allocation5], %s629_s8 }
  0x45   : > { %s212_s22 = scalar_lea.sflag [#allocation6], %s211_s0 }
  0x46   : > { %895 = dma.done.wait (%p980_p4), %s212_s22, 128  }
  0x47   : > { %897 = vsyncadd (%p980_p4), %s212_s22, 4294967168 }
  0x48   : > { %899 = dma.done.wait (%p43_p1), [#allocation6], 512  }
  0x49   : > { %901 = vsyncadd (%p43_p1), [#allocation6], 4294966784  ;;  %v668_v0 = vld [vmem:[%s1076_s23] sm:$0xff]  ;;  %v639_v6 = vld [vmem:[#allocation7] sm:$0xf]  ;;  %vm284_vm0 = vcmask 261120   ;;  %v318_v14 = vlaneseq }
  0x4a   : > { %v647_v1 = vld [vmem:[#allocation7 + $0x10] sm:$0xf]  ;;  %v673_v2 = vld [vmem:[#allocation7 + $0x14] sm:$0xf0]  ;;  %v672_v4 = vld [vmem:[#allocation7 + $0x14] sm:$0xf] }
  0x4b   : > { %v648_v3 = vor.u32 %v673_v2, %v647_v1  ;;  %v649_v5 = vld [vmem:[#allocation7 + $0x18] sm:$0xf0]  ;;  %358 = vxpose.xlu0.c.b16.start.end [1/1] (short) (narrow) %v668_v0, 16  ;;  %v671_v8 = vld [vmem:[#allocation7 + $0x4] sm:$0xf0]  ;;  %v319_v16 = vand.u32 127, %v318_v14 }
  0x4c   : > { %v652_v7 = vor.u32 %v672_v4, %v649_v5  ;;  %v670_v9 = vld [vmem:[#allocation7 + $0x4] sm:$0xf]  ;;  %v640_v10 = vor.u32 %v671_v8, %v639_v6  ;;  %v641_v11 = vld [vmem:[#allocation7 + $0x8] sm:$0xf0]  ;;  %v252_v22 = vld [vmem:[%s1076_s23] sm:$0xff]   ;;  %vm339_vm3 = vcmask 130048  }
  0x4d   : > { %294 = vmatpush.bf16.msra.mxu0 %v648_v3  ;;  %v644_v12 = vor.u32 %v670_v9, %v641_v11  ;;  %v669_v13 = vld [vmem:[%s205_s28] sm:$0xff]  ;;  %vm320_vm1 = vcmp.eq.s32.totalorder %v319_v16, 32  ;;  %v398_v24 = vunpack.c.h.bf16 %v252_v22  ;;  %v397_v25 = vunpack.c.l.bf16 %v252_v22  ;;  %s632_s18 = sshll.u32 %s1067_s2, 4  ;;  %s674_s7 = sshll.u32 %s971_s16, 4 }
  0x4e   : > { %308 = vmatpush.bf16.msra.mxu1 %v652_v7  ;;  %vm1087_vm2 = vmpackc.low %vm320_vm1, %vm320_vm1  ;;  %v927_v39 = vmov 32   ;;  %s248_s6 = scalar_lea.vmem [#allocation8], %s632_s18  ;;  %s509_s10 = scalar_lea.hbm %s1147_s3, %s674_s7 }
  0x4f   : > { %v402_v29 = vsel %vm339_vm3, %v398_v24, 0.0  ;;  %v399_v30 = vsel %vm339_vm3, %v397_v25, 0.0  ;;  %745 = vset.pattern.permute.xlu1 %v927_v39  ;;  %746 = vset.pattern.permute.xlu2 %v927_v39  ;;  %s510_s20 = sshll.u32 %s248_s6, 4  ;;  %s512_s29 = sshll.u32 %s509_s10, 4  ;;  %s511_s20 = int_to_ptr.vmem [resolvable:$true] %s510_s20  ;;  %s513_s29 = int_to_ptr.hbm [resolvable:$true] %s512_s29 }
  0x50   : > { %403 = vadd.xlane.f32.xlu1 %v402_v29  ;;  %s498_s30 = scalar_lea.sflag [#allocation4], %s1067_s2  ;;  %s860_s16 = sshra.s32 %s513_s29, 4  ;;  %s861_s16 = int_to_ptr.hbm [resolvable:$true] %s860_s16 }
  0x51   : > { %295 = vmatpush.bf16.msra.mxu0 %v640_v10  ;;  %s862_s11 = scalar_lea.hbm %s861_s16, 16  ;;  %s866_s21 = scalar_lea.hbm %s1147_s3, 32 }
  0x52   : > { %309 = vmatpush.bf16.msra.mxu1 %v644_v12  ;;  %p863_p1 = scmp.ne.s32.totalorder %s861_s16, %s862_s11  ;;  %p867_p9 = scmp.lt.s32.totalorder %s861_s16, %s1147_s3 }
  0x53   : > { %p868_p10 = scmp.lt.s32.totalorder %s866_s21, %s862_s11 }
  0x54   : > { %653 = vmatmul.msk.bf16.vlgmr.msra.gmra.mxu0 %vm284_vm0, %v669_v13  ;;  %p864_p4 = pnand %p863_p1, %p1017_p7 }
  0x55   : > { %654 = vmatmul.msk.bf16.vlgmr.msra.gmra.mxu1 %vm284_vm0, %v669_v13  ;;  %p869_p2 = por %p868_p10, %p867_p9 }
  0x56   : > { %p865_p8 = pneg %p864_p4 }
  0x58   : > { %p870_p11 = pnand %p869_p2, %p865_p8 }
  0xb2   : > { %747 = vset.pattern.permute.xlu0 %v927_v39 }
  0xbc   : > { %400 = vadd.xlane.f32.xlu0 %v399_v30 }
  0xd1   : > { %v297_v15 = vpop.f32.mrf.mxu0 }
  0xd2   : > { %v311_v17 = vpop.f32.mrf.mxu1 }
  0xd3   : > { %v316_v18 = vpack.c.bf16 %v311_v17, %v297_v15 }
  0xd5   : > { %v324_v19 = vrot.slane %v316_v18, 4  ;;  %v335_v27 = vunpack.c.l.b16 %v316_v18 }
  0xd7   : > { %v328_v28 = vsel %vm1087_vm2, 1065369472, %v324_v19 }
  0xd8   : > { %v376_v33 = vunpack.c.l.b16 %v328_v28 }
  0xd9   : > { %v299_v21 = vpop.f32.mrf.mxu0 }
  0xda   : > { %v313_v23 = vpop.f32.mrf.mxu1 }
  0xdb   : > { %v317_v26 = vpack.c.bf16 %v313_v23, %v299_v21 }
  0xdd   : > { %v325_v31 = vrot.slane %v317_v26, 4  ;;  %v336_v32 = vunpack.c.l.b16 %v317_v26 }
  0xdf   : > { %v337_v34 = vpack.c.b16 %v336_v32, %v335_v27  ;;  %v329_v35 = vsel %vm1087_vm2, 1065369472, %v325_v31 }
  0xe0   : > { %v377_v36 = vunpack.c.l.b16 %v329_v35 }
  0xe1   : > { %350 = vmatpush.bf16.msra.mxu2 %v337_v34 }
  0xe2   : > { %v378_v37 = vpack.c.b16 %v377_v36, %v376_v33 }
  0xe4   : > { %390 = vmatpush.bf16.msra.mxu3 %v378_v37  ;;  %659 = vmatmul.msk.bf16.vlgmr.msra.gmra.mxu2 %vm339_vm3, %v668_v0  ;;  %v404_v0 = vpop.xlane.xlu1 %403 }
  0xe5   : > { %vm406_vm14 = vcmp.eq.f32.partialorder %v404_v0, 0.0 }
  0xe6   : > { %v408_v1 = vsel %vm406_vm14, 1.0, %v404_v0 }
  0xe7   : > { %vm433_vm0 = vweird.f32 %v408_v1  ;;  %v439_v9 = vand.u32 2147483648, %v408_v1  ;;  %v437_v11 = vand.u32 2147483647, %v408_v1 }
  0xe9   : > { %v440_v13 = vor.u32 1.1754944e-38, %v439_v9 }
  0xf7   : > { %v366_v38 = vpop.trf.xlu0 }
  0xf8   : > { %660 = vmatmul.msk.bf16.vlgmr.msra.gmra.mxu3 %vm339_vm3, %v366_v38  ;;  %vm438_vm3 = vcmp.eq.f32.partialorder %v437_v11, 8.507059e+37 }
 0x12f   : > { %v401_v3 = vpop.xlane.xlu0 %400 }
 0x130   : > { %vm405_vm15 = vcmp.eq.f32.partialorder %v401_v3, 0.0 }
 0x131   : > { %v407_v6 = vsel %vm405_vm15, 1.0, %v401_v3 }
 0x132   : > { %v424_v25 = vand.u32 2147483648, %v407_v6  ;;  %v422_v27 = vand.u32 2147483647, %v407_v6 }
 0x134   : > { %v425_v30 = vor.u32 1.1754944e-38, %v424_v25 }
 0x167   : > { %v352_v8 = vpop.f32.mrf.mxu2 }
 0x16f   : > { %v354_v16 = vpop.f32.mrf.mxu2 }
 0x17b   : > { %v1100_v40 = vpop.f32.mrf.mxu3 }
 0x17c   : > { %vm409_vm4 = vcmp.eq.f32.partialorder %v1100_v40, 0.0 }
 0x17d   : > { %v411_v41 = vsel %vm409_vm4, 1.0, %v1100_v40  ;;  %vm418_vm4 = vweird.f32 %v407_v6 }
 0x17e   : > { %748 = vrcp.f32 %v411_v41  ;;  %v454_v47 = vand.u32 2147483648, %v411_v41  ;;  %v452_v49 = vand.u32 2147483647, %v411_v41  ;;  %vm448_vm7 = vweird.f32 %v411_v41 }
 0x180   : > { %v455_v52 = vor.u32 1.1754944e-38, %v454_v47  ;;  %vm453_vm9 = vcmp.eq.f32.partialorder %v452_v49, 8.507059e+37 }
 0x183   : > { %v1104_v42 = vpop.f32.mrf.mxu3 }
 0x184   : > { %v749_v43 = vpop.eup %748  ;;  %vm410_vm5 = vcmp.eq.f32.partialorder %v1104_v42, 0.0 }
 0x185   : > { %v444_v44 = vmul.f32 %v749_v43, %v411_v41  ;;  %v412_v45 = vsel %vm410_vm5, 1.0, %v1104_v42  ;;  %vm449_vm6 = vweird.f32 %v749_v43 }
 0x186   : > { %750 = vrcp.f32 %v412_v45  ;;  %vm450_vm8 = vmor %vm448_vm7, %vm449_vm6  ;;  %v469_v57 = vand.u32 2147483648, %v412_v45  ;;  %v467_v59 = vand.u32 2147483647, %v412_v45  ;;  %vm463_vm11 = vweird.f32 %v412_v45 }
 0x187   : > { %v445_v46 = vsub.f32 1.0, %v444_v44  ;;  %752 = vrcp.f32 %v408_v1  ;;  %vm423_vm7 = vcmp.eq.f32.partialorder %v422_v27, 8.507059e+37 }
 0x188   : > { %v470_v61 = vor.u32 1.1754944e-38, %v469_v57  ;;  %vm468_vm13 = vcmp.eq.f32.partialorder %v467_v59, 8.507059e+37  ;;  %754 = vrcp.f32 %v407_v6 }
 0x189   : > { %v446_v48 = vmul.f32 %v749_v43, %v445_v46 }
 0x18b   : > { %v447_v50 = vadd.f32 %v749_v43, %v446_v48 }
 0x18c   : > { %v751_v51 = vpop.eup %750 }
 0x18d   : > { %v459_v53 = vmul.f32 %v751_v51, %v412_v45  ;;  %v451_v54 = vsel %vm450_vm8, %v749_v43, %v447_v50  ;;  %vm464_vm10 = vweird.f32 %v751_v51  ;;  %v753_v2 = vpop.eup %752 }
 0x18e   : > { %v456_v55 = vsel %vm453_vm9, %v455_v52, %v451_v54  ;;  %vm465_vm12 = vmor %vm463_vm11, %vm464_vm10  ;;  %v429_v4 = vmul.f32 %v753_v2, %v408_v1  ;;  %vm434_vm1 = vweird.f32 %v753_v2  ;;  %v755_v12 = vpop.eup %754 }
 0x18f   : > { %v460_v56 = vsub.f32 1.0, %v459_v53  ;;  %479 = vperm.xlu1 %745, %v456_v55   ;;  %vm435_vm2 = vmor %vm433_vm0, %vm434_vm1  ;;  %v414_v14 = vmul.f32 %v755_v12, %v407_v6  ;;  %vm419_vm5 = vweird.f32 %v755_v12 }
 0x190   : > { %v430_v5 = vsub.f32 1.0, %v429_v4  ;;  %vm420_vm6 = vmor %vm418_vm4, %vm419_vm5 }
 0x191   : > { %v461_v58 = vmul.f32 %v751_v51, %v460_v56  ;;  %v415_v18 = vsub.f32 1.0, %v414_v14 }
 0x192   : > { %v431_v7 = vmul.f32 %v753_v2, %v430_v5 }
 0x193   : > { %v462_v60 = vadd.f32 %v751_v51, %v461_v58  ;;  %v416_v21 = vmul.f32 %v755_v12, %v415_v18 }
 0x194   : > { %v432_v10 = vadd.f32 %v753_v2, %v431_v7 }
 0x195   : > { %v466_v62 = vsel %vm465_vm12, %v751_v51, %v462_v60  ;;  %v417_v26 = vadd.f32 %v755_v12, %v416_v21 }
 0x196   : > { %v471_v63 = vsel %vm468_vm13, %v470_v61, %v466_v62  ;;  %v436_v15 = vsel %vm435_vm2, %v753_v2, %v432_v10 }
 0x197   : > { %484 = vperm.xlu2 %746, %v471_v63   ;;  %v441_v17 = vsel %vm438_vm3, %v440_v13, %v436_v15  ;;  %v421_v31 = vsel %vm420_vm6, %v755_v12, %v417_v26 }
 0x198   : > { %v474_v19 = vmul.f32 %v441_v17, %v354_v16  ;;  %v426_v32 = vsel %vm423_vm7, %v425_v30, %v421_v31 }
 0x199   : > { %v473_v33 = vmul.f32 %v426_v32, %v352_v8 }
 0x19a   : > { %v476_v23 = vmax.f32 %v474_v19, 0.0 }
 0x19b   : > { %v475_v36 = vmax.f32 %v473_v33, 0.0 }
 0x1f1   : > { %v485_v20 = vpop.permute.xlu2 %484 }
 0x1f2   : > { %v488_v22 = vmul.f32 %v485_v20, %v1104_v42 }
 0x1f4   : > { %v490_v24 = vmax.f32 %v488_v22, 0.0 }
 0x1f6   : > { %v492_v28 = vadd.f32 %v490_v24, %v476_v23 }
 0x1f8   : > { %v494_v29 = vmul.f32 0.5, %v492_v28 }
 0x1fa   : > { %496 = vst [vmem:[%s248_s6 + $0x8] sm:$0xff] %v494_v29 }
 0x201   : > { %v480_v34 = vpop.permute.xlu1 %479 }
 0x202   : > { %v487_v35 = vmul.f32 %v480_v34, %v1100_v40 }
 0x204   : > { %v489_v37 = vmax.f32 %v487_v35, 0.0 }
 0x206   : > { %v491_v38 = vadd.f32 %v489_v37, %v475_v36 }
 0x208   : > { %v493_v39 = vmul.f32 0.5, %v491_v38 }
 0x20a   : > { %495 = vst [vmem:[%s248_s6] sm:$0xff] %v493_v39 }
 0x20b   : > { %873 = shalt.err (!%p870_p11)
}
 0x20c   : > { %s928_s2 = smov 128   ;;  %s929_s28 = smov 8  }
 0x20d   : > { %683 = dma.vmem_to_hbm [thread:$0]  (%p1017_p7), %s511_s20, 256, %s513_s29, %s498_s30, %s928_s2, %s928_s2, %s929_s28  }
 0x20e PF: > { %s527_s0 = sand.u32 1, %s908_s12   ;;  %p1159_p12 = scmp.ge.s32.totalorder %s920_s15, 2 }
 0x20f   : > { %s528_s22 = scalar_lea.sflag [#allocation4], %s527_s0 }
 0x210   : > { %p697_p13 = pnand %p1159_p12, %p985_p6 }
 0x212   : > { %p698_p0 = pneg %p697_p13 }
 0x214   : > { %903 = dma.done.wait (%p698_p0), %s528_s22, 256  }
 0x215   : > { %905 = vsyncadd (%p698_p0), %s528_s22, 4294967040  ;;  %p19_p3 = scmp.ge.s32.totalorder %s1003_s26, 4   ;;  %s1160_s12 = smov %s912_s13 }
 0x216   : > { %s1161_s13 = smov %s916_s14  ;;  %s1162_s14 = smov %s1013_s4 }
 0x217   : > { %s1163_s15 = smov %s1003_s26  ;;  %21 = sbr.rel (!%p19_p3) target bundleno = 10 (0xa), region = 94 }
 0x21c   :  { %534 = vsyncpa [#allocation3], 1 }
 0x21d   :  { %536 = vsyncpa [#allocation3 + $0x1], 1 }
 0x21e   :  { %537 = vsyncpa [#allocation6], 1 }
 0x21f   :  { %539 = vsyncpa [#allocation6 + $0x1], 1 }
 0x220   :  { %540 = vsyncpa [#allocation4], 1 }
 0x221   :  { %542 = vsyncpa [#allocation4 + $0x1], 1 }

</bundles_post_ra>
